<compile_context>
chip_gen: v7x
topology: tpu7x:2x2x1
jax: 0.10.0
libtpu: 0.0.40
codegen_flags: <defaults>
</compile_context>

<pallas_src>
import math

import jax
import jax.numpy as jnp
from jax.experimental import pallas as pl
from jax.experimental.pallas import tpu as pltpu


def _round_up(x, m):
    return ((x + m - 1) // m) * m


def _sublane_multiple(dtype):
    itemsize = jnp.dtype(dtype).itemsize
    if itemsize >= 4:
        return 8
    if itemsize == 2:
        return 16
    return 32


def _fc_kernel_single_k(x_ref, w_ref, b_ref, o_ref):
    """One (tile_m, tile_n) output tile; the whole K is resident.

    Grid = (i, j), both parallel. No scratch, no revisits of the output block.
      x_ref: (tile_m, K)      w_ref: (tile_n, K)   (PyTorch (out, in) layout)
      b_ref: (1, tile_n)      o_ref: (tile_m, tile_n)
    """
    acc = jax.lax.dot_general(
        x_ref[...],
        w_ref[...],
        dimension_numbers=(((1,), (1,)), ((), ())),  # contract last dims: x @ w.T
        preferred_element_type=jnp.float32,
    )
    o_ref[...] = (acc + b_ref[...].astype(jnp.float32)).astype(o_ref.dtype)


def _fc_kernel_multi_k(x_ref, w_ref, b_ref, o_ref, acc_ref):
    """K-blocked variant. Grid = (i, j, k) with k innermost / 'arbitrary'.

    acc_ref: (tile_m, tile_n) f32 VMEM accumulator, resident across k.
    """
    k = pl.program_id(2)
    part = jax.lax.dot_general(
        x_ref[...],
        w_ref[...],
        dimension_numbers=(((1,), (1,)), ((), ())),
        preferred_element_type=jnp.float32,
    )

    @pl.when(k == 0)
    def _first():
        acc_ref[...] = part            # plain write: no zero-init + add pass

    @pl.when(k > 0)
    def _accum():
        acc_ref[...] += part

    @pl.when(k == pl.num_programs(2) - 1)
    def _finalize():
        o_ref[...] = (acc_ref[...] + b_ref[...].astype(jnp.float32)).astype(o_ref.dtype)


def fc_layer_pallas(x, weight, bias, *, tile_m=512, tile_n=512, tile_k=None,
                    max_single_k=1024, compute_dtype=None):
    """y = x @ weight.T + bias  (PyTorch nn.Linear semantics).

    x:      (M, feature_num)
    weight: (class_num, feature_num)   -- PyTorch layout, not transposed on host
    bias:   (class_num,)
    compute_dtype: optionally cast x/weight (e.g. jnp.bfloat16) for the MXU;
                   accumulation stays f32, output keeps x's original dtype.
    """
    M, F = x.shape
    C, F2 = weight.shape
    assert F == F2, "feature dim mismatch"
    assert bias.shape == (C,)

    out_dtype = x.dtype
    if compute_dtype is not None:
        x = x.astype(compute_dtype)
        weight = weight.astype(compute_dtype)

    sub = _sublane_multiple(x.dtype)   # 8 (f32) / 16 (bf16) / 32 (8-bit)
    lane = 128

    # ----- tile sizing ------------------------------------------------------
    tile_m = max(sub, min(tile_m, _round_up(M, sub)))
    tile_n = max(lane, min(tile_n, _round_up(C, lane)))

    Fp_lane = _round_up(F, lane)
    if tile_k is None:
        # Keep the whole K resident whenever it is modest: removes the
        # reduction grid axis, the accumulator scratch and all pl.when gating.
        tile_k = Fp_lane if Fp_lane <= max_single_k else 512
    tile_k = max(lane, min(tile_k, Fp_lane))

    Mp = _round_up(M, tile_m)
    Cp = _round_up(C, tile_n)
    Fp = _round_up(F, tile_k)

    # Guarantee >= 2 blocks over the parallel (M, N) axes when it costs no
    # extra padding: v7x has 2 TensorCores sharing the grid; a 1-block
    # parallel grid would idle one of them (harmless on v5e/v6e).
    if (Mp // tile_m) * (Cp // tile_n) == 1 and Mp % (2 * sub) == 0:
        tile_m = Mp // 2

    grid_m, grid_n, grid_k = Mp // tile_m, Cp // tile_n, Fp // tile_k

    # ----- padding ----------------------------------------------------------
    # Zero-padded K columns contribute nothing; padded C columns are sliced
    # off below.
    # TODO(synk): in a real model, pre-pad the static weight/bias once at
    # parameter setup and keep the lane-padded output for the downstream op,
    # avoiding these extra per-call HBM passes.
    xp = x if (Mp == M and Fp == F) else jnp.pad(x, ((0, Mp - M), (0, Fp - F)))
    wp = (weight if (Cp == C and Fp == F)
          else jnp.pad(weight, ((0, Cp - C), (0, Fp - F))))
    bp = (bias if Cp == C else jnp.pad(bias, (0, Cp - C))).reshape(1, Cp)

    # Per-step VMEM worst case (f32, 512x512x1024 single-K): ~10 MiB with
    # double buffering -> fits v5e's 16 MiB scoped default; 32 MiB limit is
    # safe on all of v5e (128 MiB phys), v6e (128 MiB) and v7x (64 MiB).
    compiler_params = pltpu.CompilerParams(
        dimension_semantics=(("parallel", "parallel") if grid_k == 1
                             else ("parallel", "parallel", "arbitrary")),
        vmem_limit_bytes=32 * 1024 * 1024,
    )

    if grid_k == 1:
        grid_spec = pltpu.PrefetchScalarGridSpec(
            num_scalar_prefetch=0,
            grid=(grid_m, grid_n),
            in_specs=[
                pl.BlockSpec((tile_m, tile_k), lambda i, j: (i, 0)),   # x
                pl.BlockSpec((tile_n, tile_k), lambda i, j: (j, 0)),   # weight (C,F)
                pl.BlockSpec((1, tile_n), lambda i, j: (0, j)),        # bias
            ],
            out_specs=pl.BlockSpec((tile_m, tile_n), lambda i, j: (i, j)),
        )
        kernel = _fc_kernel_single_k
    else:
        grid_spec = pltpu.PrefetchScalarGridSpec(
            num_scalar_prefetch=0,
            grid=(grid_m, grid_n, grid_k),
            in_specs=[
                pl.BlockSpec((tile_m, tile_k), lambda i, j, k: (i, k)),   # x
                pl.BlockSpec((tile_n, tile_k), lambda i, j, k: (j, k)),   # weight
                pl.BlockSpec((1, tile_n), lambda i, j, k: (0, j)),        # bias
            ],
            out_specs=pl.BlockSpec((tile_m, tile_n), lambda i, j, k: (i, j)),
            scratch_shapes=[pltpu.VMEM((tile_m, tile_n), jnp.float32)],
        )
        kernel = _fc_kernel_multi_k

    out = pl.pallas_call(
        kernel,
        out_shape=jax.ShapeDtypeStruct((Mp, Cp), out_dtype),
        grid_spec=grid_spec,
        compiler_params=compiler_params,
    )(xp, wp, bp)

    if Mp != M or Cp != C:
        out = out[:M, :C]
    return out


def fc_layer(x, weight, bias, *, use_pallas=None, **kw):
    """Dispatcher: small FC heads go to the fused XLA matmul (Pallas launch +
    pad/slice + grid-step overhead dominates there); large ones to Pallas."""
    M, F = x.shape
    C = weight.shape[0]
    if use_pallas is None:
        itemsize = jnp.dtype(x.dtype).itemsize
        work_bytes = (M * F + C * F + M * C) * itemsize
        # Use Pallas once the working set is big enough that tiling /
        # pipelining matter, or K is deep enough to need blocking.
        use_pallas = work_bytes > (8 << 20) or F > 2048
    if not use_pallas:
        y = jnp.dot(x, weight.T, preferred_element_type=jnp.float32) + bias
        return y.astype(x.dtype)
    return fc_layer_pallas(x, weight, bias, **kw)


if __name__ == "__main__":
    key = jax.random.PRNGKey(0)
    kx, kw, kb = jax.random.split(key, 3)

    def make(batch, feature_num, class_num):
        # PyTorch-style init: U(-1/sqrt(fan_in), 1/sqrt(fan_in))
        bound = 1.0 / math.sqrt(feature_num)
        x = jax.random.normal(kx, (batch, feature_num), dtype=jnp.float32)
        w = jax.random.uniform(kw, (class_num, feature_num), jnp.float32,
                               minval=-bound, maxval=bound)
        b = jax.random.uniform(kb, (class_num,), jnp.float32,
                               minval=-bound, maxval=bound)
        return x, w, b

    # 1) Small CIFAR-10-style FC head, forced through Pallas.
    #    Single-K kernel (K resident), ragged class_num padded to a lane-dense
    #    128-wide output, M split into 2 parallel blocks -> grid = (2, 1).
    x, w, b = make(32, 84, 10)
    y = jax.block_until_ready(fc_layer(x, w, b, use_pallas=True))
    assert y.shape == (32, 10)
    assert jnp.allclose(y, x @ w.T + b, atol=1e-4, rtol=1e-4)

    # 2) Larger head with tile_k forced small to exercise the K-blocked
    #    accumulator path: grid = (2, 1, 3) = (parallel, parallel, arbitrary).
    x, w, b = make(256, 640, 192)
    y = jax.block_until_ready(fc_layer(x, w, b, use_pallas=True, tile_k=256))
    assert y.shape == (256, 192)
    assert jnp.allclose(y, x @ w.T + b, atol=1e-4, rtol=1e-4)

    # 3) Tiny problem: dispatcher falls back to the fused XLA matmul.
    x, w, b = make(8, 32, 16)
    y = jax.block_until_ready(fc_layer(x, w, b))
    assert jnp.allclose(y, x @ w.T + b, atol=1e-5, rtol=1e-5)

    print("KERNEL_OK")
</pallas_src>

<mosaic_0001>
module attributes {stable_mosaic.version = 11 : i64} {
  func.func @_fc_kernel_single_k(%arg0: i32, %arg1: i32, %arg2: memref<16x128xf32, #tpu.memory_space<vmem>>, %arg3: memref<128x128xf32, #tpu.memory_space<vmem>>, %arg4: memref<1x128xf32, #tpu.memory_space<vmem>>, %arg5: memref<16x128xf32, #tpu.memory_space<vmem>>) attributes {dimension_semantics = [#tpu.dimension_semantics<parallel>, #tpu.dimension_semantics<parallel>], iteration_bounds = array<i64: 2, 1>, scalar_prefetch = 0 : i64, scratch_operands = 0 : i64, tpu.core_type = #tpu.core_type<tc>, window_params = [{transform_indices = @transform_0, window_bounds = array<i64: 16, 128>}, {transform_indices = @transform_1, window_bounds = array<i64: 128, 128>}, {transform_indices = @transform_2, window_bounds = array<i64: 1, 128>}, {transform_indices = @transform_3, window_bounds = array<i64: 16, 128>}]} {
    %c0 = arith.constant 0 : index
    %c0_0 = arith.constant 0 : index
    %0 = vector.load %arg2[%c0, %c0_0] : memref<16x128xf32, #tpu.memory_space<vmem>>, vector<16x128xf32>
    %c0_1 = arith.constant 0 : index
    %c0_2 = arith.constant 0 : index
    %1 = vector.load %arg3[%c0_1, %c0_2] : memref<128x128xf32, #tpu.memory_space<vmem>>, vector<128x128xf32>
    %cst = arith.constant dense<0.000000e+00> : vector<16x128xf32>
    %2 = tpu.matmul %0, %1, %cst {dimension_numbers = #tpu.dot_dimension_numbers<[1], [1], [0], [0], [0, 0, 1, 0], [], []>} : vector<16x128xf32>, vector<128x128xf32>, vector<16x128xf32> -> vector<16x128xf32>
    %c0_3 = arith.constant 0 : index
    %c0_4 = arith.constant 0 : index
    %3 = vector.load %arg4[%c0_3, %c0_4] : memref<1x128xf32, #tpu.memory_space<vmem>>, vector<1x128xf32>
    %4 = vector.broadcast %3 : vector<1x128xf32> to vector<16x128xf32>
    %5 = arith.addf %2, %4 : vector<16x128xf32>
    %c0_5 = arith.constant 0 : index
    %c0_6 = arith.constant 0 : index
    %6 = vector.load %arg5[%c0_5, %c0_6] : memref<16x128xf32, #tpu.memory_space<vmem>>, vector<16x128xf32>
    tpu.vector_store %arg5[%c0_5, %c0_6], %5 {strides = array<i32>} : memref<16x128xf32, #tpu.memory_space<vmem>>, vector<16x128xf32>,
    return
  }
  func.func @transform_0(%arg0: i32, %arg1: i32) -> (i32, i32) {
    %c0_i32 = arith.constant 0 : i32
    %c0_i32_0 = arith.constant 0 : i32
    return %arg0, %c0_i32 : i32, i32
  }
  func.func @transform_1(%arg0: i32, %arg1: i32) -> (i32, i32) {
    %c0_i32 = arith.constant 0 : i32
    %c0_i32_0 = arith.constant 0 : i32
    return %arg1, %c0_i32 : i32, i32
  }
  func.func @transform_2(%arg0: i32, %arg1: i32) -> (i32, i32) {
    %c0_i32 = arith.constant 0 : i32
    %c0_i32_0 = arith.constant 0 : i32
    return %c0_i32, %arg1 : i32, i32
  }
  func.func @transform_3(%arg0: i32, %arg1: i32) -> (i32, i32) {
    %c0_i32 = arith.constant 0 : i32
    return %arg0, %arg1 : i32, i32
  }
}

</mosaic_0001>

<bundles_post_ra>
// kernel: tpu_custom_call.1
= control target key start
LH: loop header
LB: loop body
LE: loop exit
PB: predicated region body
PF: predicated region fallthrough
CT: control target
= control target key end

     0   :  { %8 = vsyncpa [#allocation3], 0  ;;  %s1059_s0 = inlined_call_operand.hbm [shape: f32[32,128], index: 0, kind: input, shape index: {}]   ;;  %s1060_s1 = inlined_call_operand.hbm [shape: f32[128,128], index: 1, kind: input, shape index: {}]   ;;  %s1061_s2 = inlined_call_operand.vmem [shape: f32[1,128], index: 2, kind: input, shape index: {}]   ;;  %s1062_s3 = inlined_call_operand.hbm [shape: f32[32,128], index: 3, kind: output, shape index: {}]  }
   0x1   :  { %10 = vsyncpa [#allocation3 + $0x1], 0 }
   0x2   :  { %11 = vsyncpa [#allocation6], 0 }
   0x3   :  { %12 = vsyncpa [#allocation4], 0 }
   0x4   :  { %14 = vsyncpa [#allocation4 + $0x1], 0  ;;  %s823_s12 = smov 0   ;;  %s825_s13 = smov 0  }
   0x5   :  { %s827_s14 = smov 0   ;;  %s829_s15 = smov 0  }
   0x6   :  { %s831_s16 = smov 0   ;;  %s833_s17 = smov 0  }
   0x7 LB: > { %s467_s18 = sadd.s32 4294967295, %s794_s17   ;;  %s468_s19 = sadd.s32 4294967294, %s794_s17   ;;  %s794_s17 = sphi %s833_s17, %s20_s17   ;;  %s790_s16 = sphi %s831_s16, %s1086_s16   ;;  %s786_s15 = sphi %s829_s15, %s1085_s15   ;;  %s782_s14 = sphi %s827_s14, %s1084_s14   ;;  %s778_s13 = sphi %s825_s13, %s1083_s13   ;;  %s774_s12 = sphi %s823_s12, %s1082_s12  }
   0x8   : > { %p52_p0 = scmp.ne.s32.totalorder %s778_s13, %s774_s12  ;;  %p857_p1 = scmp.eq.s32.totalorder %s467_s18, 0 }
   0x9   : > { %p861_p2 = scmp.eq.s32.totalorder %s467_s18, 1  ;;  %p136_p3 = scmp.eq.s32.totalorder %s468_s19, 1 }
   0xa   : > { %s1067_s20 = scalar_select %p857_p1, 1, 0 }
   0xb   : > { %s1068_s21 = scalar_select %p861_p2, 1, 0 }
   0xc   : > { %p867_p4 = por %p857_p1, %p52_p0  ;;  %p469_p5 = scmp.ge.s32.totalorder %s794_s17, 1 }
   0xd   : > { %p872_p6 = por %p136_p3, %p52_p0  ;;  %p143_p7 = scmp.lt.s32.totalorder %s794_s17, 3 }
   0xe   : > { %s1069_s22 = scalar_select %p867_p4, 1, 0 }
   0xf   : > { %s1070_s23 = scalar_select %p872_p6, 1, 0 }
  0x10   : > { %p877_p8 = pnand %p469_p5, %p143_p7  ;;  %s796_s25 = smov [#allocation5]  }
  0x11   : > { %s158_s26 = sshll.u32 %s796_s25, 4  ;;  %s32_s28 = sadd.s32 1, %s790_s16  ;;  %s159_s26 = int_to_ptr.vmem [resolvable:$true] %s158_s26 }
  0x12   : > { %s1071_s24 = scalar_select %p877_p8, 1, 0 }
  0x13   : > { %p581_p9 = pneg %p877_p8  ;;  %s650_s4 = scalar_lea.hbm %s1060_s1, 2048 }
  0x14   : > { %p651_p12 = scmp.ne.s32.totalorder %s1060_s1, %s650_s4  ;;  %p657_p5 = scmp.lt.u32.totalorder %s650_s4, %s1060_s1 }
  0x15   : > { %p886_p11 = pnand %p581_p9, %p857_p1 }
  0x17   : > { %p652_p13 = pneg %p886_p11 }
  0x19   : > { %p653_p0 = pnand %p652_p13, %p651_p12 }
  0x1b   : > { %p654_p3 = pneg %p653_p0 }
  0x1d   : > { %p659_p7 = pnand %p657_p5, %p654_p3 }
  0x1f   : > { %662 = shalt.err (!%p659_p7)
}
  0x20   : > { %s663_s9 = scalar_lea.vmem %s159_s26, 2048  ;;  %p671_p1 = scmp.lt.s32.totalorder %s159_s26, %s159_s26 }
  0x21   : > { %p664_p9 = scmp.ne.s32.totalorder %s159_s26, %s663_s9  ;;  %p672_p4 = scmp.lt.s32.totalorder %s663_s9, %s663_s9 }
  0x23   : > { %p666_p10 = pnand %p664_p9, %p652_p13  ;;  %p673_p8 = por %p672_p4, %p671_p1 }
  0x25   : > { %p667_p6 = pneg %p666_p10 }
  0x27   : > { %p674_p2 = pnand %p673_p8, %p667_p6 }
  0x29   : > { %677 = shalt.err (!%p674_p2)
}
  0x2a   : > { %s797_s10 = smov 128   ;;  %s798_s11 = smov 8  }
  0x2b   : > { %584 = dma.hbm_to_vmem [thread:$0]  (!%p886_p11), %s1060_s1, 2048, %s159_s26, [#allocation6], %s797_s10, %s797_s10, %s798_s11  }
  0x2c   : > { %p34_p1 = scmp.ge.s32.totalorder %s32_s28, 2  ;;  %s39_s25 = sadd.s32 1, %s782_s14 }
  0x2d   : > { %p46_p2 = scmp.ne.s32.totalorder %s782_s14, %s778_s13  ;;  %p47_p4 = scmp.eq.s32.totalorder %s794_s17, 0 }
  0x2e   : > { %s1088_s28 = smov (%p34_p1, %s32_s28), 0  ;;  %p1074_p8 = scmp.ne.s32.totalorder %s1068_s21, 0 }
  0x2f   : > { %p916_p6 = por %p47_p4, %p46_p2  ;;  %s36_s30 = ssub.s32 %s790_s16, %s1088_s28 }
  0x30   : > { %p922_p10 = por %p1074_p8, %p46_p2  ;;  %p594_p12 = scmp.lt.s32.totalorder %s794_s17, 2 }
  0x31   : > { %p37_p11 = scmp.eq.s32.totalorder %s36_s30, 0  ;;  %s178_s26 = sand.u32 1, %s782_s14  }
  0x32   : > { %s473_s4 = sshll.u32 %s178_s26, 4  ;;  %s486_s6 = sshll.u32 %s790_s16, 8 }
  0x33   : > { %s931_s5 = scalar_select %p37_p11, %s782_s14, %s39_s25  }
  0x34   : > { %s937_s9 = scalar_lea.hbm %s1059_s0, %s486_s6  ;;  %s182_s21 = scalar_lea.vmem [#allocation2], %s473_s4 }
  0x35   : > { %s189_s18 = sshll.u32 %s182_s21, 4  ;;  %p943_p13 = pnand %p594_p12, %p916_p6  ;;  %s939_s18 = int_to_ptr.vmem [resolvable:$true] %s189_s18 }
  0x36   : > { %s947_s25 = scalar_lea.sflag [#allocation3], %s178_s26  ;;  %s678_s30 = scalar_lea.hbm %s937_s9, 256 }
  0x37   : > { %p679_p0 = scmp.ne.s32.totalorder %s937_s9, %s678_s30  ;;  %p680_p3 = pneg %p943_p13 }
  0x38   : > { %s683_s29 = scalar_lea.hbm %s1059_s0, 512  ;;  %p684_p9 = scmp.lt.u32.totalorder %s937_s9, %s1059_s0 }
  0x39   : > { %p681_p5 = pnand %p680_p3, %p679_p0  ;;  %p685_p1 = scmp.lt.u32.totalorder %s683_s29, %s678_s30 }
  0x3a   : > { %p687_p4 = scmp.lt.u32.totalorder %s678_s30, %s937_s9 }
  0x3b   : > { %p682_p7 = pneg %p681_p5  ;;  %p686_p2 = por %p685_p1, %p684_p9 }
  0x3d   : > { %p688_p6 = por %p687_p4, %p686_p2 }
  0x3f   : > { %p689_p8 = pnand %p688_p6, %p682_p7 }
  0x41   : > { %692 = shalt.err (!%p689_p8)
}
  0x42   : > { %s693_s26 = scalar_lea.vmem %s939_s18, 256  ;;  %s799_s21 = smov [#allocation2]  }
  0x43   : > { %p694_p12 = scmp.ne.s32.totalorder %s939_s18, %s693_s26  ;;  %s698_s4 = sshll.u32 %s799_s21, 4  ;;  %s699_s4 = int_to_ptr.vmem [resolvable:$false] %s698_s4 }
  0x44   : > { %s700_s6 = scalar_lea.vmem %s699_s4, 512  ;;  %p701_p5 = scmp.lt.s32.totalorder %s939_s18, %s699_s4 }
  0x45   : > { %p696_p11 = pnand %p694_p12, %p680_p3  ;;  %p702_p9 = scmp.lt.s32.totalorder %s700_s6, %s693_s26 }
  0x47   : > { %p697_p0 = pneg %p696_p11  ;;  %p703_p1 = por %p702_p9, %p701_p5 }
  0x49   : > { %p704_p2 = pnand %p703_p1, %p697_p0 }
  0x4b   : > { %707 = shalt.err (!%p704_p2)
}
  0x4c   : > { %588 = dma.hbm_to_vmem [thread:$0]  (!%p943_p13), %s937_s9, 256, %s939_s18, %s947_s25, %s797_s10, %s797_s10, %s798_s11  }
  0x4d   : > { %p1077_p3 = scmp.ne.s32.totalorder %s1071_s24, 0 }
  0x4e   : > { %s981_s30 = sand.u32 (!%p1077_p3), 1, %s778_s13   ;;  %p1078_p7 = scmp.ne.s32.totalorder (!%p1077_p3), %s1069_s22, 0 }
  0x4f   : > { %201 = sbr.rel (%p1077_p3) target bundleno = 387 (0x183), region = 32  ;;  %s477_s29 = sshll.u32 (!%p1077_p3), %s981_s30, 4 }
  0x50   : > { %s204_s7 = scalar_lea.sflag (!%p1077_p3), [#allocation3], %s981_s30  ;;  %s987_s19 = scalar_lea.vmem (!%p1077_p3), [#allocation2], %s477_s29 }
  0x56   : > { %761 = dma.done.wait (%p1078_p7), %s204_s7, 256  }
  0x57   : > { %763 = vsyncadd (%p1078_p7), %s204_s7, 4294967040  ;;  %p1079_p13 = scmp.ne.s32.totalorder %s1067_s20, 0 }
  0x59   : > { %765 = dma.done.wait (%p1079_p13), [#allocation6], 2048  }
  0x5a   : > { %767 = vsyncadd (%p1079_p13), [#allocation6], 4294965248  ;;  %v245_v0 = vld [vmem:[#allocation5] sm:$0xff]  ;;  %v246_v1 = vld [vmem:[#allocation5 + $0x8] sm:$0xff]  ;;  %s236_s20 = scalar_lea.vmem [#allocation7], %s477_s29  ;;  %s487_s11 = sshll.u32 %s786_s15, 8 }
  0x5b   : > { %v247_v2 = vld [vmem:[#allocation5 + $0x10] sm:$0xff]  ;;  %v541_v3 = vpack.c.bf16 %v246_v1, %v245_v0  ;;  %v248_v4 = vld [vmem:[#allocation5 + $0x18] sm:$0xff]  ;;  %v249_v7 = vld [vmem:[#allocation5 + $0x20] sm:$0xff]  ;;  %s360_s22 = sshll.u32 %s236_s20, 4  ;;  %s1010_s25 = scalar_lea.hbm %s1062_s3, %s487_s11  ;;  %s1005_s22 = int_to_ptr.vmem [resolvable:$true] %s360_s22 }
  0x5c   : > { %v545_v5 = vpack.c.bf16 %v248_v4, %v247_v2  ;;  %v243_v6 = vld [vmem:[%s987_s19] sm:$0xff]  ;;  %v250_v8 = vld [vmem:[#allocation5 + $0x28] sm:$0xff]  ;;  %v252_v11 = vld [vmem:[#allocation5 + $0x38] sm:$0xff]  ;;  %s346_s8 = scalar_lea.sflag [#allocation4], %s981_s30  ;;  %s708_s26 = scalar_lea.vmem %s1005_s22, 256 }
  0x5d   : > { %542 = vmatprep.subr.bf16.mxu0 %v541_v3  ;;  %538 = vmatprep.mubr.f32.mxu0 %v243_v6  ;;  %v549_v9 = vpack.c.bf16 %v250_v8, %v249_v7  ;;  %v251_v10 = vld [vmem:[#allocation5 + $0x30] sm:$0xff]  ;;  %v253_v13 = vld [vmem:[#allocation5 + $0x40] sm:$0xff]  ;;  %v254_v14 = vld [vmem:[#allocation5 + $0x48] sm:$0xff]  ;;  %p709_p4 = scmp.ne.s32.totalorder %s1005_s22, %s708_s26  ;;  %s800_s15 = smov [#allocation7]  }
  0x5e   : > { %544 = vmatpush3.bf16.xpose.msra.mxu0 %v541_v3  ;;  %v553_v12 = vpack.c.bf16 %v252_v11, %v251_v10  ;;  %v557_v15 = vpack.c.bf16 %v254_v14, %v253_v13  ;;  %v255_v16 = vld [vmem:[#allocation5 + $0x50] sm:$0xff]  ;;  %v256_v17 = vld [vmem:[#allocation5 + $0x58] sm:$0xff]  ;;  %v257_v19 = vld [vmem:[#allocation5 + $0x60] sm:$0xff]  ;;  %s712_s21 = sshll.u32 %s800_s15, 4  ;;  %s713_s21 = int_to_ptr.vmem [resolvable:$false] %s712_s21 }
  0x5f   : > { %546 = vmatprep.subr.bf16.mxu0 %v545_v5  ;;  %v561_v18 = vpack.c.bf16 %v256_v17, %v255_v16  ;;  %v258_v20 = vld [vmem:[#allocation5 + $0x68] sm:$0xff]  ;;  %v259_v22 = vld [vmem:[#allocation5 + $0x70] sm:$0xff]  ;;  %v260_v23 = vld [vmem:[#allocation5 + $0x78] sm:$0xff]  ;;  %p710_p6 = pnand %p709_p4, %p922_p10  ;;  %s714_s4 = scalar_lea.vmem %s713_s21, 512 }
  0x60   : > { %v565_v21 = vpack.c.bf16 %v258_v20, %v257_v19  ;;  %v569_v24 = vpack.c.bf16 %v260_v23, %v259_v22  ;;  %v244_v25 = vld [vmem:[%s987_s19 + $0x8] sm:$0xff]  ;;  %v480_v26 = vld [vmem:[%s1061_s2] ss:$0 sm:$0xff]  ;;  %p715_p12 = scmp.lt.s32.totalorder %s1005_s22, %s713_s21  ;;  %p716_p11 = scmp.lt.s32.totalorder %s714_s4, %s708_s26 }
  0x61   : > { %p711_p8 = pneg %p710_p6 }
  0x62   : > { %p717_p0 = por %p716_p11, %p715_p12 }
  0x64   : > { %p718_p5 = pnand %p717_p0, %p711_p8 }
  0x66   : > { %548 = vmatpush3.bf16.xpose.msra.mxu0 %v545_v5 }
  0x67   : > { %550 = vmatprep.subr.bf16.mxu0 %v549_v9 }
  0x6e   : > { %552 = vmatpush3.bf16.xpose.msra.mxu0 %v549_v9 }
  0x6f   : > { %554 = vmatprep.subr.bf16.mxu0 %v553_v12 }
  0x76   : > { %556 = vmatpush3.bf16.xpose.msra.mxu0 %v553_v12 }
  0x77   : > { %558 = vmatprep.subr.bf16.mxu0 %v557_v15 }
  0x7e   : > { %560 = vmatpush3.bf16.xpose.msra.mxu0 %v557_v15 }
  0x7f   : > { %562 = vmatprep.subr.bf16.mxu0 %v561_v18 }
  0x86   : > { %564 = vmatpush3.bf16.xpose.msra.mxu0 %v561_v18 }
  0x87   : > { %566 = vmatprep.subr.bf16.mxu0 %v565_v21 }
  0x8e   : > { %568 = vmatpush3.bf16.xpose.msra.mxu0 %v565_v21 }
  0x8f   : > { %570 = vmatprep.subr.bf16.mxu0 %v569_v24 }
  0x96   : > { %572 = vmatpush3.bf16.xpose.msra.mxu0 %v569_v24 }
  0x9d   : > { %539 = vmatmul.mubr.f32.vlgmr.msra.gmra.mrb[0].mxu0 %v244_v25 }
 0x170   : > { %v540_v27 = vpop.f32.mrb[0].mxu0 }
 0x171   : > { %v340_v28 = vadd.f32 %v540_v27, %v480_v26  ;;  %v334_v29 = vpop.f32.mrb[1].mxu0 }
 0x172   : > { %v335_v30 = vadd.f32 %v480_v26, %v334_v29 }
 0x173   : > { %344 = vst [vmem:[%s236_s20 + $0x8] sm:$0xff] %v340_v28 }
 0x174   : > { %343 = vst [vmem:[%s236_s20] sm:$0xff] %v335_v30 }
 0x175   : > { %721 = shalt.err (!%p718_p5)
}
 0x176   : > { %s722_s6 = scalar_lea.hbm %s1010_s25, 256  ;;  %s726_s19 = scalar_lea.hbm %s1062_s3, 512 }
 0x177   : > { %p723_p9 = scmp.ne.s32.totalorder %s1010_s25, %s722_s6  ;;  %p727_p3 = scmp.lt.u32.totalorder %s1010_s25, %s1062_s3 }
 0x178   : > { %p728_p7 = scmp.lt.u32.totalorder %s726_s19, %s722_s6  ;;  %p730_p4 = scmp.lt.u32.totalorder %s722_s6, %s1010_s25 }
 0x179   : > { %p724_p1 = pnand %p723_p9, %p922_p10 }
 0x17a   : > { %p729_p13 = por %p728_p7, %p727_p3 }
 0x17b   : > { %p725_p2 = pneg %p724_p1 }
 0x17c   : > { %p731_p6 = por %p730_p4, %p729_p13 }
 0x17e   : > { %p732_p8 = pnand %p731_p6, %p725_p2 }
 0x180   : > { %735 = shalt.err (!%p732_p8)
}
 0x181   : > { %s801_s10 = smov 128   ;;  %s802_s11 = smov 8  }
 0x182   : > { %579 = dma.vmem_to_hbm [thread:$0]  (%p922_p10), %s1005_s22, 256, %s1010_s25, %s346_s8, %s801_s10, %s801_s10, %s802_s11  }
 0x183 PF: > { %s375_s9 = sand.u32 1, %s774_s12   ;;  %p1080_p12 = scmp.ne.s32.totalorder %s1070_s23, 0 }
 0x184   : > { %p1081_p11 = scmp.ge.s32.totalorder %s794_s17, 2  ;;  %s376_s18 = scalar_lea.sflag [#allocation4], %s375_s9 }
 0x186   : > { %p590_p0 = pnand %p1081_p11, %p1080_p12 }
 0x188   : > { %769 = dma.done.wait (!%p590_p0), %s376_s18, 256  }
 0x189   : > { %771 = vsyncadd (!%p590_p0), %s376_s18, 4294967040  ;;  %s20_s17 = sadd.s32 1, %s794_s17   ;;  %s1082_s12 = smov %s778_s13 }
 0x18a   : > { %p17_p5 = scmp.ge.s32.totalorder %s20_s17, 4   ;;  %s1083_s13 = smov %s782_s14 }
 0x18b   : > { %s1084_s14 = smov %s931_s5  ;;  %s1085_s15 = smov %s790_s16 }
 0x18c   : > { %s1086_s16 = smov %s1088_s28  ;;  %19 = sbr.rel (!%p17_p5) target bundleno = 7 (0x7), region = 85 }
 0x193   :  { %381 = vsyncpa [#allocation3], 1 }
 0x194   :  { %383 = vsyncpa [#allocation3 + $0x1], 1 }
 0x195   :  { %384 = vsyncpa [#allocation6], 1 }
 0x196   :  { %385 = vsyncpa [#allocation4], 1 }
 0x197   :  { %387 = vsyncpa [#allocation4 + $0x1], 1 }

</bundles_post_ra>
